<compile_context>
chip_gen: v5e
topology: v5e:2x2
jax: 0.10.0
libtpu: 0.0.40
codegen_flags: <defaults>
</compile_context>

<pallas_src>
import math

import numpy as np
import jax
import jax.numpy as jnp
from jax import lax
from jax.experimental import pallas as pl
from jax.experimental.pallas import tpu as pltpu


# ---------------------------------------------------------------------------
# Hyperparameters (small, consistent with the module: d=32, h=4, f=64, l=2).
# ---------------------------------------------------------------------------
B = 2              # batch
S = 8              # sequence length
D_MODEL = 32       # d_model
NUM_HEADS = 4
HEAD_DIM = D_MODEL // NUM_HEADS
FFN_HIDDEN = 64
N_LAYERS = 2
LN_EPS = 1e-6      # nn.LayerNorm(d_model, eps=1e-06) in the module

BS = B * S                   # 16 flattened (batch, seq) rows
KV_ROWS = NUM_HEADS * BS     # 64 head-stacked key/value rows

# Per-layer parameter slab layout: (P_ROWS, 128) f32, lane-dense.
#   rows  0:32  lanes   0:96  -> Wqkv (1/sqrt(head_dim) folded into Q columns)
#   rows  0:32  lanes  96:128 -> Wo
#   rows 32:64  lanes   0:64  -> W1
#   rows 32:64  lanes  64:128 -> W2^T
#   row  64     lanes   0:96  -> bqkv ; 96:128 -> bo
#   row  65     lanes   0:64  -> b1   ; 64:96  -> b2
#   row  66     lanes 0:32 / 32:64 / 64:96 / 96:128 -> ln1_g/ln1_b/ln2_g/ln2_b
BIAS_ROW = 2 * D_MODEL       # 64
LN_ROW = BIAS_ROW + 2        # 66
P_ROWS = 72                  # padded up to a multiple of 8

# Shared constant slab, (64, 128) f32 (layer-invariant, DMA'd once):
#   lanes 0:32               -> head_mask (KV_ROWS x D block-diagonal mask)
#   rows 0:16, lanes 64:128  -> additive cross-batch bias (0 / -1e30), (BS x KV_ROWS)
CONST_ROWS = KV_ROWS
BIAS_LANE0 = 2 * D_MODEL     # 64


def _layernorm(x, gamma, beta, eps):
    # PyTorch LayerNorm: biased variance over the last dim.
    mu = jnp.mean(x, axis=-1, keepdims=True)
    xc = x - mu
    var = jnp.mean(xc * xc, axis=-1, keepdims=True)
    return xc * lax.rsqrt(var + eps) * gamma + beta


def encoder_stack_kernel(x_ref, const_ref, w_ref, out_ref):
    f32 = jnp.float32

    # Layer 0: seed the resident activation.  The output block index is
    # constant across the layer grid, so out_ref stays in VMEM for the whole
    # stack and doubles as the inter-layer activation buffer.
    @pl.when(pl.program_id(0) == 0)
    def _():
        out_ref[...] = x_ref[...]

    x = out_ref[...].astype(f32)                                     # (16, 32)

    # --- shared constants (precomputed host-side, DMA'd once) ---------------
    head_mask = const_ref[:, 0:D_MODEL]                              # (64, 32)
    batch_bias = const_ref[0:BS, BIAS_LANE0:BIAS_LANE0 + KV_ROWS]    # (16, 64)

    # --- per-layer parameters (one lane-dense slab, f32, no casts) ----------
    wqkv = w_ref[0, 0:D_MODEL, 0:3 * D_MODEL]                        # (32, 96)
    wo = w_ref[0, 0:D_MODEL, 3 * D_MODEL:4 * D_MODEL]                # (32, 32)
    w1 = w_ref[0, D_MODEL:2 * D_MODEL, 0:FFN_HIDDEN]                 # (32, 64)
    w2t = w_ref[0, D_MODEL:2 * D_MODEL, FFN_HIDDEN:2 * FFN_HIDDEN]   # (32, 64)
    bqkv = w_ref[0, BIAS_ROW:BIAS_ROW + 1, 0:3 * D_MODEL]            # (1, 96)
    bo = w_ref[0, BIAS_ROW:BIAS_ROW + 1, 3 * D_MODEL:4 * D_MODEL]
    b1 = w_ref[0, BIAS_ROW + 1:BIAS_ROW + 2, 0:FFN_HIDDEN]
    b2 = w_ref[0, BIAS_ROW + 1:BIAS_ROW + 2, FFN_HIDDEN:FFN_HIDDEN + D_MODEL]
    ln1_g = w_ref[0, LN_ROW:LN_ROW + 1, 0:D_MODEL]
    ln1_b = w_ref[0, LN_ROW:LN_ROW + 1, D_MODEL:2 * D_MODEL]
    ln2_g = w_ref[0, LN_ROW:LN_ROW + 1, 2 * D_MODEL:3 * D_MODEL]
    ln2_b = w_ref[0, LN_ROW:LN_ROW + 1, 3 * D_MODEL:4 * D_MODEL]

    # --- fused QKV projection (attention scale already folded into Wq/bq) ---
    qkv = jnp.dot(x, wqkv, preferred_element_type=f32) + bqkv        # (16, 96)
    q = qkv[:, 0:D_MODEL]
    k = qkv[:, D_MODEL:2 * D_MODEL]
    v = qkv[:, 2 * D_MODEL:3 * D_MODEL]

    # --- block-diagonal multi-head attention --------------------------------
    # Key/value rows are head-stacked (row c = h*BS + key_index); head_mask
    # zeroes every lane not owned by that row's head, so all heads' scores are
    # one matmul.
    k_blk = jnp.concatenate([k] * NUM_HEADS, axis=0) * head_mask     # (64, 32)
    v_blk = jnp.concatenate([v] * NUM_HEADS, axis=0) * head_mask     # (64, 32)
    # Numerator and per-head softmax denominators fused into ONE matmul.
    pv_rhs = jnp.concatenate([v_blk, head_mask], axis=1)             # (64, 64)

    scores = lax.dot_general(q, k_blk, (((1,), (1,)), ((), ())),
                             preferred_element_type=f32)             # (16, 64)
    scores = scores + batch_bias           # additive 0 / -1e30 cross-batch mask
    scores = scores - jnp.max(scores, axis=-1, keepdims=True)
    e = jnp.exp(scores)                                              # f32

    nd = jnp.dot(e, pv_rhs, preferred_element_type=f32)              # (16, 64)
    attn = nd[:, 0:D_MODEL] / nd[:, D_MODEL:2 * D_MODEL]             # exact norm
    attn = jnp.dot(attn, wo, preferred_element_type=f32) + bo

    # TODO(synk): dropout1/dropout2 (p=0.1) are identity (eval mode); the
    # padding src_mask of the original Encoder is not supported here.

    # --- residual + LayerNorm 1, FeedForward, residual + LayerNorm 2 --------
    ff_in = _layernorm(x + attn, ln1_g, ln1_b, LN_EPS)
    h1 = jnp.maximum(jnp.dot(ff_in, w1, preferred_element_type=f32) + b1, 0.0)
    ff_out = lax.dot_general(h1, w2t, (((1,), (1,)), ((), ())),
                             preferred_element_type=f32) + b2
    out = _layernorm(ff_in + ff_out, ln2_g, ln2_b, LN_EPS)

    out_ref[...] = out.astype(out_ref.dtype)


@jax.jit
def encoder_stack(x, w_slab, const_slab):
    """x: (B, S, D) f32; w_slab: (L, P_ROWS, 128); const_slab: (64, 128)."""
    x2 = x.reshape(BS, D_MODEL)
    out = pl.pallas_call(
        encoder_stack_kernel,
        out_shape=jax.ShapeDtypeStruct((BS, D_MODEL), x.dtype),
        grid_spec=pltpu.PrefetchScalarGridSpec(
            num_scalar_prefetch=0,
            grid=(N_LAYERS,),
            in_specs=[
                pl.BlockSpec((BS, D_MODEL), lambda l: (0, 0)),        # x (once)
                pl.BlockSpec((CONST_ROWS, 128), lambda l: (0, 0)),    # consts (once)
                pl.BlockSpec((1, P_ROWS, 128), lambda l: (l, 0, 0)),  # layer weights
            ],
            out_specs=pl.BlockSpec((BS, D_MODEL), lambda l: (0, 0)),  # resident
        ),
        compiler_params=pltpu.CompilerParams(
            dimension_semantics=("arbitrary",)),   # layers are sequential
    )(x2, const_slab, w_slab)
    return out.reshape(B, S, D_MODEL)


# ---------------------------------------------------------------------------
# Parameter init (PyTorch-like) + one-time host-side packing.
# ---------------------------------------------------------------------------
def _xavier_uniform(key, fan_in, fan_out):
    limit = math.sqrt(6.0 / (fan_in + fan_out))
    return jax.random.uniform(key, (fan_in, fan_out), jnp.float32, -limit, limit)


def init_params(key):
    keys = jax.random.split(key, 6)
    D, Hf = D_MODEL, FFN_HIDDEN
    z = lambda n: jnp.zeros((1, n), jnp.float32)
    return {
        # "math" orientation (in, out): y = x @ W + b
        "wq": _xavier_uniform(keys[0], D, D), "bq": z(D),
        "wk": _xavier_uniform(keys[1], D, D), "bk": z(D),
        "wv": _xavier_uniform(keys[2], D, D), "bv": z(D),
        "wo": _xavier_uniform(keys[3], D, D), "bo": z(D),
        "ln1_g": jnp.ones((1, D), jnp.float32), "ln1_b": z(D),
        "w1": _xavier_uniform(keys[4], D, Hf), "b1": z(Hf),
        "w2": _xavier_uniform(keys[5], Hf, D), "b2": z(D),
        "ln2_g": jnp.ones((1, D), jnp.float32), "ln2_b": z(D),
    }


def pack_params(layer_params):
    """Host-side, once: fuse QKV, fold the attention scale, pack every layer's
    parameters into one lane-dense (P_ROWS, 128) slab; stack over layers."""
    scale = 1.0 / math.sqrt(HEAD_DIM)
    slabs = []
    for p in layer_params:
        wqkv = jnp.concatenate([p["wq"] * scale, p["wk"], p["wv"]], axis=1)
        bqkv = jnp.concatenate([p["bq"] * scale, p["bk"], p["bv"]], axis=1)
        slab = jnp.zeros((P_ROWS, 128), jnp.float32)
        slab = slab.at[0:D_MODEL, 0:3 * D_MODEL].set(wqkv)
        slab = slab.at[0:D_MODEL, 3 * D_MODEL:4 * D_MODEL].set(p["wo"])
        slab = slab.at[D_MODEL:2 * D_MODEL, 0:FFN_HIDDEN].set(p["w1"])
        slab = slab.at[D_MODEL:2 * D_MODEL, FFN_HIDDEN:2 * FFN_HIDDEN].set(p["w2"].T)
        slab = slab.at[BIAS_ROW, 0:3 * D_MODEL].set(bqkv[0])
        slab = slab.at[BIAS_ROW, 3 * D_MODEL:4 * D_MODEL].set(p["bo"][0])
        slab = slab.at[BIAS_ROW + 1, 0:FFN_HIDDEN].set(p["b1"][0])
        slab = slab.at[BIAS_ROW + 1, FFN_HIDDEN:FFN_HIDDEN + D_MODEL].set(p["b2"][0])
        slab = slab.at[LN_ROW, 0:D_MODEL].set(p["ln1_g"][0])
        slab = slab.at[LN_ROW, D_MODEL:2 * D_MODEL].set(p["ln1_b"][0])
        slab = slab.at[LN_ROW, 2 * D_MODEL:3 * D_MODEL].set(p["ln2_g"][0])
        slab = slab.at[LN_ROW, 3 * D_MODEL:4 * D_MODEL].set(p["ln2_b"][0])
        slabs.append(slab)
    return jnp.stack(slabs, axis=0)                  # (L, P_ROWS, 128)


def make_const_slab():
    """Host-side constants: block-diagonal head mask + cross-batch additive bias."""
    c = np.zeros((CONST_ROWS, 128), np.float32)
    row_head = np.arange(KV_ROWS)[:, None] // BS                # (64, 1)
    lane_head = np.arange(D_MODEL)[None, :] // HEAD_DIM         # (1, 32)
    c[:, 0:D_MODEL] = (row_head == lane_head).astype(np.float32)
    q_batch = np.arange(BS)[:, None] // S                       # (16, 1)
    k_batch = (np.arange(KV_ROWS)[None, :] % BS) // S           # (1, 64)
    c[0:BS, BIAS_LANE0:BIAS_LANE0 + KV_ROWS] = np.where(
        q_batch == k_batch, 0.0, -1e30).astype(np.float32)
    return jnp.asarray(c)


# ---------------------------------------------------------------------------
# Pure-JAX reference (straightforward per-head implementation) for checking.
# ---------------------------------------------------------------------------
_HI = jax.lax.Precision.HIGHEST


def _hdot(a, b):
    return jnp.dot(a, b, precision=_HI)


def encoder_layer_reference(x, p):
    def ln(t, g, b):
        mu = jnp.mean(t, -1, keepdims=True)
        var = jnp.mean((t - mu) ** 2, -1, keepdims=True)
        return (t - mu) * lax.rsqrt(var + LN_EPS) * g + b

    outs = []
    for bi in range(B):
        xb = x[bi]                                            # (S, D)
        q = _hdot(xb, p["wq"]) + p["bq"][0]
        k = _hdot(xb, p["wk"]) + p["bk"][0]
        v = _hdot(xb, p["wv"]) + p["bv"][0]
        heads = []
        for h in range(NUM_HEADS):
            sl = slice(h * HEAD_DIM, (h + 1) * HEAD_DIM)
            s = _hdot(q[:, sl], k[:, sl].T) / math.sqrt(HEAD_DIM)
            pr = jax.nn.softmax(s, axis=-1)
            heads.append(_hdot(pr, v[:, sl]))
        a = _hdot(jnp.concatenate(heads, axis=-1), p["wo"]) + p["bo"][0]
        ff_in = ln(xb + a, p["ln1_g"][0], p["ln1_b"][0])
        h1 = jnp.maximum(_hdot(ff_in, p["w1"]) + p["b1"][0], 0.0)
        ff = _hdot(h1, p["w2"]) + p["b2"][0]
        outs.append(ln(ff_in + ff, p["ln2_g"][0], p["ln2_b"][0]))
    return jnp.stack(outs, axis=0)


if __name__ == "__main__":
    key = jax.random.PRNGKey(0)
    k_x, k_p = jax.random.split(key)
    x = jax.random.normal(k_x, (B, S, D_MODEL), jnp.float32)
    layer_params = [init_params(k) for k in jax.random.split(k_p, N_LAYERS)]
    w_slab = pack_params(layer_params)
    const_slab = make_const_slab()

    out = encoder_stack(x, w_slab, const_slab)
    jax.block_until_ready(out)

    assert out.shape == (B, S, D_MODEL)
    assert bool(jnp.all(jnp.isfinite(out)))

    ref = x
    for p in layer_params:
        ref = encoder_layer_reference(ref, p)
    max_err = float(jnp.max(jnp.abs(out - ref)))
    # All-f32 kernel math with exact softmax normalisation -> tight agreement.
    assert max_err < 5e-2, f"max abs error vs reference: {max_err}"

    print("KERNEL_OK")
</pallas_src>

<mosaic_0001>
module attributes {stable_mosaic.version = 11 : i64} {
  func.func @encoder_stack_kernel(%arg0: i32, %arg1: memref<16x32xf32, #tpu.memory_space<vmem>>, %arg2: memref<64x128xf32, #tpu.memory_space<vmem>>, %arg3: memref<1x72x128xf32, #tpu.memory_space<vmem>>, %arg4: memref<16x32xf32, #tpu.memory_space<vmem>>) attributes {dimension_semantics = [#tpu.dimension_semantics<arbitrary>], iteration_bounds = array<i64: 2>, scalar_prefetch = 0 : i64, scratch_operands = 0 : i64, tpu.core_type = #tpu.core_type<tc>, window_params = [{pipeline_mode = #tpu.pipeline_mode<synchronous>, transform_indices = @transform_0, window_bounds = array<i64: 16, 32>}, {pipeline_mode = #tpu.pipeline_mode<synchronous>, transform_indices = @transform_1, window_bounds = array<i64: 64, 128>}, {transform_indices = @transform_2, window_bounds = array<i64: 1, 72, 128>}, {pipeline_mode = #tpu.pipeline_mode<synchronous>, transform_indices = @transform_3, window_bounds = array<i64: 16, 32>}]} {
    %c0_i32 = arith.constant 0 : i32
    %0 = arith.cmpi eq, %arg0, %c0_i32 : i32
    %1 = arith.extui %0 : i1 to i32
    %c0_i32_0 = arith.constant 0 : i32
    %2 = arith.cmpi ne, %1, %c0_i32_0 : i32
    scf.if %2 {
      %c0_56 = arith.constant 0 : index
      %c0_57 = arith.constant 0 : index
      %106 = vector.load %arg1[%c0_56, %c0_57] : memref<16x32xf32, #tpu.memory_space<vmem>>, vector<16x32xf32>
      %c0_58 = arith.constant 0 : index
      %c0_59 = arith.constant 0 : index
      %107 = vector.load %arg4[%c0_58, %c0_59] : memref<16x32xf32, #tpu.memory_space<vmem>>, vector<16x32xf32>
      tpu.vector_store %arg4[%c0_58, %c0_59], %106 {strides = array<i32>} : memref<16x32xf32, #tpu.memory_space<vmem>>, vector<16x32xf32>,
    } else {
    }
    %c0 = arith.constant 0 : index
    %c0_1 = arith.constant 0 : index
    %3 = vector.load %arg4[%c0, %c0_1] : memref<16x32xf32, #tpu.memory_space<vmem>>, vector<16x32xf32>
    %c0_2 = arith.constant 0 : index
    %c0_3 = arith.constant 0 : index
    %4 = vector.load %arg2[%c0_2, %c0_3] : memref<64x128xf32, #tpu.memory_space<vmem>>, vector<64x32xf32>
    %c0_4 = arith.constant 0 : index
    %c64 = arith.constant 64 : index
    %5 = vector.load %arg2[%c0_4, %c64] : memref<64x128xf32, #tpu.memory_space<vmem>>, vector<16x64xf32>
    %c0_5 = arith.constant 0 : index
    %c0_6 = arith.constant 0 : index
    %c0_7 = arith.constant 0 : index
    %6 = vector.load %arg3[%c0_5, %c0_6, %c0_7] : memref<1x72x128xf32, #tpu.memory_space<vmem>>, vector<1x32x96xf32>
    %7 = vector.shape_cast %6 : vector<1x32x96xf32> to vector<32x96xf32>
    %c0_8 = arith.constant 0 : index
    %c0_9 = arith.constant 0 : index
    %c96 = arith.constant 96 : index
    %8 = vector.load %arg3[%c0_8, %c0_9, %c96] : memref<1x72x128xf32, #tpu.memory_space<vmem>>, vector<1x32x32xf32>
    %9 = vector.shape_cast %8 : vector<1x32x32xf32> to vector<32x32xf32>
    %c0_10 = arith.constant 0 : index
    %c32 = arith.constant 32 : index
    %c0_11 = arith.constant 0 : index
    %10 = vector.load %arg3[%c0_10, %c32, %c0_11] : memref<1x72x128xf32, #tpu.memory_space<vmem>>, vector<1x32x64xf32>
    %11 = vector.shape_cast %10 : vector<1x32x64xf32> to vector<32x64xf32>
    %c0_12 = arith.constant 0 : index
    %c32_13 = arith.constant 32 : index
    %c64_14 = arith.constant 64 : index
    %12 = vector.load %arg3[%c0_12, %c32_13, %c64_14] : memref<1x72x128xf32, #tpu.memory_space<vmem>>, vector<1x32x64xf32>
    %13 = vector.shape_cast %12 : vector<1x32x64xf32> to vector<32x64xf32>
    %c0_15 = arith.constant 0 : index
    %c64_16 = arith.constant 64 : index
    %c0_17 = arith.constant 0 : index
    %14 = vector.load %arg3[%c0_15, %c64_16, %c0_17] : memref<1x72x128xf32, #tpu.memory_space<vmem>>, vector<1x1x96xf32>
    %15 = vector.shape_cast %14 : vector<1x1x96xf32> to vector<1x96xf32>
    %c0_18 = arith.constant 0 : index
    %c64_19 = arith.constant 64 : index
    %c96_20 = arith.constant 96 : index
    %16 = vector.load %arg3[%c0_18, %c64_19, %c96_20] : memref<1x72x128xf32, #tpu.memory_space<vmem>>, vector<1x1x32xf32>
    %17 = vector.shape_cast %16 : vector<1x1x32xf32> to vector<1x32xf32>
    %c0_21 = arith.constant 0 : index
    %c65 = arith.constant 65 : index
    %c0_22 = arith.constant 0 : index
    %18 = vector.load %arg3[%c0_21, %c65, %c0_22] : memref<1x72x128xf32, #tpu.memory_space<vmem>>, vector<1x1x64xf32>
    %19 = vector.shape_cast %18 : vector<1x1x64xf32> to vector<1x64xf32>
    %c0_23 = arith.constant 0 : index
    %c65_24 = arith.constant 65 : index
    %c64_25 = arith.constant 64 : index
    %20 = vector.load %arg3[%c0_23, %c65_24, %c64_25] : memref<1x72x128xf32, #tpu.memory_space<vmem>>, vector<1x1x32xf32>
    %21 = vector.shape_cast %20 : vector<1x1x32xf32> to vector<1x32xf32>
    %c0_26 = arith.constant 0 : index
    %c66 = arith.constant 66 : index
    %c0_27 = arith.constant 0 : index
    %22 = vector.load %arg3[%c0_26, %c66, %c0_27] : memref<1x72x128xf32, #tpu.memory_space<vmem>>, vector<1x1x32xf32>
    %23 = vector.shape_cast %22 : vector<1x1x32xf32> to vector<1x32xf32>
    %c0_28 = arith.constant 0 : index
    %c66_29 = arith.constant 66 : index
    %c32_30 = arith.constant 32 : index
    %24 = vector.load %arg3[%c0_28, %c66_29, %c32_30] : memref<1x72x128xf32, #tpu.memory_space<vmem>>, vector<1x1x32xf32>
    %25 = vector.shape_cast %24 : vector<1x1x32xf32> to vector<1x32xf32>
    %c0_31 = arith.constant 0 : index
    %c66_32 = arith.constant 66 : index
    %c64_33 = arith.constant 64 : index
    %26 = vector.load %arg3[%c0_31, %c66_32, %c64_33] : memref<1x72x128xf32, #tpu.memory_space<vmem>>, vector<1x1x32xf32>
    %27 = vector.shape_cast %26 : vector<1x1x32xf32> to vector<1x32xf32>
    %c0_34 = arith.constant 0 : index
    %c66_35 = arith.constant 66 : index
    %c96_36 = arith.constant 96 : index
    %28 = vector.load %arg3[%c0_34, %c66_35, %c96_36] : memref<1x72x128xf32, #tpu.memory_space<vmem>>, vector<1x1x32xf32>
    %29 = vector.shape_cast %28 : vector<1x1x32xf32> to vector<1x32xf32>
    %cst = arith.constant dense<0.000000e+00> : vector<16x96xf32>
    %30 = tpu.matmul %3, %7, %cst {dimension_numbers = #tpu.dot_dimension_numbers<[1], [0], [0], [1], [0, 0, 1, 1], [], []>} : vector<16x32xf32>, vector<32x96xf32>, vector<16x96xf32> -> vector<16x96xf32>
    %31 = vector.broadcast %15 : vector<1x96xf32> to vector<16x96xf32>
    %32 = arith.addf %30, %31 : vector<16x96xf32>
    %33 = vector.extract_strided_slice %32 {offsets = [0, 0], sizes = [16, 32], strides = [1, 1]} : vector<16x96xf32> to vector<16x32xf32>
    %34 = vector.extract_strided_slice %32 {offsets = [0, 32], sizes = [16, 32], strides = [1, 1]} : vector<16x96xf32> to vector<16x32xf32>
    %35 = vector.extract_strided_slice %32 {offsets = [0, 64], sizes = [16, 32], strides = [1, 1]} : vector<16x96xf32> to vector<16x32xf32>
    %36 = tpu.concatenate %34, %34, %34, %34 in 0 : vector<16x32xf32>, vector<16x32xf32>, vector<16x32xf32>, vector<16x32xf32> -> vector<64x32xf32>
    %37 = arith.mulf %36, %4 : vector<64x32xf32>
    %38 = tpu.concatenate %35, %35, %35, %35 in 0 : vector<16x32xf32>, vector<16x32xf32>, vector<16x32xf32>, vector<16x32xf32> -> vector<64x32xf32>
    %39 = arith.mulf %38, %4 : vector<64x32xf32>
    %40 = tpu.concatenate %39, %4 in 1 : vector<64x32xf32>, vector<64x32xf32> -> vector<64x64xf32>
    %cst_37 = arith.constant dense<0.000000e+00> : vector<16x64xf32>
    %41 = tpu.matmul %33, %37, %cst_37 {dimension_numbers = #tpu.dot_dimension_numbers<[1], [1], [0], [0], [0, 0, 1, 0], [], []>} : vector<16x32xf32>, vector<64x32xf32>, vector<16x64xf32> -> vector<16x64xf32>
    %42 = arith.addf %41, %5 : vector<16x64xf32>
    %cst_38 = arith.constant dense<0xFF800000> : vector<16xf32>
    %43 = vector.multi_reduction <maximumf>, %42, %cst_38 [1] : vector<16x64xf32> to vector<16xf32>
    %44 = vector.shape_cast %43 : vector<16xf32> to vector<16x1xf32>
    %45 = vector.broadcast %44 : vector<16x1xf32> to vector<16x64xf32>
    %46 = arith.subf %42, %45 : vector<16x64xf32>
    %47 = math.exp %46 : vector<16x64xf32>
    %cst_39 = arith.constant dense<0.000000e+00> : vector<16x64xf32>
    %48 = tpu.matmul %47, %40, %cst_39 {dimension_numbers = #tpu.dot_dimension_numbers<[1], [0], [0], [1], [0, 0, 1, 1], [], []>} : vector<16x64xf32>, vector<64x64xf32>, vector<16x64xf32> -> vector<16x64xf32>
    %49 = vector.extract_strided_slice %48 {offsets = [0, 0], sizes = [16, 32], strides = [1, 1]} : vector<16x64xf32> to vector<16x32xf32>
    %50 = vector.extract_strided_slice %48 {offsets = [0, 32], sizes = [16, 32], strides = [1, 1]} : vector<16x64xf32> to vector<16x32xf32>
    %51 = arith.divf %49, %50 : vector<16x32xf32>
    %cst_40 = arith.constant dense<0.000000e+00> : vector<16x32xf32>
    %52 = tpu.matmul %51, %9, %cst_40 {dimension_numbers = #tpu.dot_dimension_numbers<[1], [0], [0], [1], [0, 0, 1, 1], [], []>} : vector<16x32xf32>, vector<32x32xf32>, vector<16x32xf32> -> vector<16x32xf32>
    %53 = vector.broadcast %17 : vector<1x32xf32> to vector<16x32xf32>
    %54 = arith.addf %52, %53 : vector<16x32xf32>
    %55 = arith.addf %3, %54 : vector<16x32xf32>
    %cst_41 = arith.constant dense<0.000000e+00> : vector<16xf32>
    %56 = vector.multi_reduction <add>, %55, %cst_41 [1] : vector<16x32xf32> to vector<16xf32>
    %57 = vector.shape_cast %56 : vector<16xf32> to vector<16x1xf32>
    %cst_42 = arith.constant 3.200000e+01 : f32
    %58 = vector.broadcast %cst_42 : f32 to vector<16x1xf32>
    %59 = arith.divf %57, %58 : vector<16x1xf32>
    %60 = vector.broadcast %59 : vector<16x1xf32> to vector<16x32xf32>
    %61 = arith.subf %55, %60 : vector<16x32xf32>
    %62 = arith.mulf %61, %61 : vector<16x32xf32>
    %cst_43 = arith.constant dense<0.000000e+00> : vector<16xf32>
    %63 = vector.multi_reduction <add>, %62, %cst_43 [1] : vector<16x32xf32> to vector<16xf32>
    %64 = vector.shape_cast %63 : vector<16xf32> to vector<16x1xf32>
    %cst_44 = arith.constant 3.200000e+01 : f32
    %65 = vector.broadcast %cst_44 : f32 to vector<16x1xf32>
    %66 = arith.divf %64, %65 : vector<16x1xf32>
    %cst_45 = arith.constant 9.99999997E-7 : f32
    %67 = vector.broadcast %cst_45 : f32 to vector<16x1xf32>
    %68 = arith.addf %66, %67 : vector<16x1xf32>
    %69 = math.rsqrt %68 : vector<16x1xf32>
    %70 = vector.broadcast %69 : vector<16x1xf32> to vector<16x32xf32>
    %71 = arith.mulf %61, %70 : vector<16x32xf32>
    %72 = vector.broadcast %23 : vector<1x32xf32> to vector<16x32xf32>
    %73 = arith.mulf %71, %72 : vector<16x32xf32>
    %74 = vector.broadcast %25 : vector<1x32xf32> to vector<16x32xf32>
    %75 = arith.addf %73, %74 : vector<16x32xf32>
    %cst_46 = arith.constant dense<0.000000e+00> : vector<16x64xf32>
    %76 = tpu.matmul %75, %11, %cst_46 {dimension_numbers = #tpu.dot_dimension_numbers<[1], [0], [0], [1], [0, 0, 1, 1], [], []>} : vector<16x32xf32>, vector<32x64xf32>, vector<16x64xf32> -> vector<16x64xf32>
    %77 = vector.broadcast %19 : vector<1x64xf32> to vector<16x64xf32>
    %78 = arith.addf %76, %77 : vector<16x64xf32>
    %cst_47 = arith.constant 0.000000e+00 : f32
    %79 = vector.broadcast %cst_47 : f32 to vector<16x64xf32>
    %80 = arith.maximumf %78, %79 : vector<16x64xf32>
    %cst_48 = arith.constant dense<0.000000e+00> : vector<16x32xf32>
    %81 = tpu.matmul %80, %13, %cst_48 {dimension_numbers = #tpu.dot_dimension_numbers<[1], [1], [0], [0], [0, 0, 1, 0], [], []>} : vector<16x64xf32>, vector<32x64xf32>, vector<16x32xf32> -> vector<16x32xf32>
    %82 = vector.broadcast %21 : vector<1x32xf32> to vector<16x32xf32>
    %83 = arith.addf %81, %82 : vector<16x32xf32>
    %84 = arith.addf %75, %83 : vector<16x32xf32>
    %cst_49 = arith.constant dense<0.000000e+00> : vector<16xf32>
    %85 = vector.multi_reduction <add>, %84, %cst_49 [1] : vector<16x32xf32> to vector<16xf32>
    %86 = vector.shape_cast %85 : vector<16xf32> to vector<16x1xf32>
    %cst_50 = arith.constant 3.200000e+01 : f32
    %87 = vector.broadcast %cst_50 : f32 to vector<16x1xf32>
    %88 = arith.divf %86, %87 : vector<16x1xf32>
    %89 = vector.broadcast %88 : vector<16x1xf32> to vector<16x32xf32>
    %90 = arith.subf %84, %89 : vector<16x32xf32>
    %91 = arith.mulf %90, %90 : vector<16x32xf32>
    %cst_51 = arith.constant dense<0.000000e+00> : vector<16xf32>
    %92 = vector.multi_reduction <add>, %91, %cst_51 [1] : vector<16x32xf32> to vector<16xf32>
    %93 = vector.shape_cast %92 : vector<16xf32> to vector<16x1xf32>
    %cst_52 = arith.constant 3.200000e+01 : f32
    %94 = vector.broadcast %cst_52 : f32 to vector<16x1xf32>
    %95 = arith.divf %93, %94 : vector<16x1xf32>
    %cst_53 = arith.constant 9.99999997E-7 : f32
    %96 = vector.broadcast %cst_53 : f32 to vector<16x1xf32>
    %97 = arith.addf %95, %96 : vector<16x1xf32>
    %98 = math.rsqrt %97 : vector<16x1xf32>
    %99 = vector.broadcast %98 : vector<16x1xf32> to vector<16x32xf32>
    %100 = arith.mulf %90, %99 : vector<16x32xf32>
    %101 = vector.broadcast %27 : vector<1x32xf32> to vector<16x32xf32>
    %102 = arith.mulf %100, %101 : vector<16x32xf32>
    %103 = vector.broadcast %29 : vector<1x32xf32> to vector<16x32xf32>
    %104 = arith.addf %102, %103 : vector<16x32xf32>
    %c0_54 = arith.constant 0 : index
    %c0_55 = arith.constant 0 : index
    %105 = vector.load %arg4[%c0_54, %c0_55] : memref<16x32xf32, #tpu.memory_space<vmem>>, vector<16x32xf32>
    tpu.vector_store %arg4[%c0_54, %c0_55], %104 {strides = array<i32>} : memref<16x32xf32, #tpu.memory_space<vmem>>, vector<16x32xf32>,
    return
  }
  func.func @transform_0(%arg0: i32) -> (i32, i32) {
    %c0_i32 = arith.constant 0 : i32
    %c0_i32_0 = arith.constant 0 : i32
    %c0_i32_1 = arith.constant 0 : i32
    return %c0_i32, %c0_i32_0 : i32, i32
  }
  func.func @transform_1(%arg0: i32) -> (i32, i32) {
    %c0_i32 = arith.constant 0 : i32
    %c0_i32_0 = arith.constant 0 : i32
    %c0_i32_1 = arith.constant 0 : i32
    return %c0_i32, %c0_i32_0 : i32, i32
  }
  func.func @transform_2(%arg0: i32) -> (i32, i32, i32) {
    %c0_i32 = arith.constant 0 : i32
    %c0_i32_0 = arith.constant 0 : i32
    %c0_i32_1 = arith.constant 0 : i32
    return %arg0, %c0_i32, %c0_i32_0 : i32, i32, i32
  }
  func.func @transform_3(%arg0: i32) -> (i32, i32) {
    %c0_i32 = arith.constant 0 : i32
    %c0_i32_0 = arith.constant 0 : i32
    %c0_i32_1 = arith.constant 0 : i32
    return %c0_i32, %c0_i32_0 : i32, i32
  }
}

</mosaic_0001>

<bundles_post_ra>
// kernel: encoder_stack.1
= control target key start
LH: loop header
LB: loop body
LE: loop exit
PB: predicated region body
PF: predicated region fallthrough
CT: control target
= control target key end

     0   :  { %8 = vsyncpa [#allocation3], 0  ;;  %s1569_s0 = inlined_call_operand.hbm [shape: f32[16,32], index: 0, kind: input, shape index: {}]   ;;  %s1570_s1 = inlined_call_operand.hbm [shape: f32[64,128], index: 1, kind: input, shape index: {}]   ;;  %s1571_s2 = inlined_call_operand.hbm [shape: f32[2,72,128], index: 2, kind: input, shape index: {}]   ;;  %s1572_s3 = inlined_call_operand.hbm [shape: f32[16,32], index: 3, kind: output, shape index: {}]  }
   0x1   :  { %9 = vsyncpa [#allocation6], 0 }
   0x2   :  { %10 = vsyncpa [#allocation4], 0  ;;  %s1240_s12 = smov 0   ;;  %s1242_s13 = smov 0  }
   0x3   :  { %s1244_s14 = smov 0   ;;  %s1246_s15 = smov 0  }
   0x4 LB: > { %s1259_s16 = sadd.s32 4294967295, %s1207_s15   ;;  %p78_p0 = scmp.ne.s32.totalorder %s1199_s13, %s1195_s12  ;;  %s1207_s15 = sphi %s1246_s15, %s1579_s15   ;;  %s1203_s14 = sphi %s1244_s14, %s1578_s14   ;;  %s1199_s13 = sphi %s1242_s13, %s1577_s13   ;;  %s1195_s12 = sphi %s1240_s12, %s1576_s12  }
   0x5   : > { %p79_p1 = scmp.eq.s32.totalorder %s1259_s16, 0  ;;  %p877_p2 = scmp.ge.s32.totalorder %s1207_s15, 1 }
   0x6   : > { %p110_p3 = scmp.lt.s32.totalorder %s1207_s15, 3  ;;  %p878_p4 = scmp.ne.s32.totalorder %s1259_s16, 0 }
   0x7   : > { %p1268_p5 = por %p79_p1, %p78_p0  ;;  %s121_s20 = sshll.u32 %s1569_s0, 4  ;;  %s122_s20 = int_to_ptr.hbm [resolvable:$true] %s121_s20 }
   0x8   : > { %p1275_p6 = pnand %p877_p2, %p110_p3  ;;  %s1209_s22 = smov [#allocation2]  }
   0x9   : > { %s123_s23 = sshll.u32 %s1209_s22, 4  ;;  %s135_s26 = sshll.u32 %s1570_s1, 4  ;;  %s124_s23 = int_to_ptr.vmem [resolvable:$true] %s123_s23  ;;  %s136_s26 = int_to_ptr.hbm [resolvable:$true] %s135_s26 }
   0xa   : > { %p931_p7 = pneg %p1275_p6  ;;  %s1210_s27 = smov 128  }
   0xb   : > { %s1211_s28 = smov 8   ;;  %s1212_s29 = smov [#allocation5]  }
   0xc   : > { %p932_p8 = pnand %p931_p7, %p79_p1  ;;  %s137_s30 = sshll.u32 %s1212_s29, 4  ;;  %s138_s30 = int_to_ptr.vmem [resolvable:$true] %s137_s30 }
   0xd   : > { %s1293_s4 = sadd.s32 1, %s1207_s15   ;;  %s65_s5 = sadd.s32 1, %s1203_s14 }
   0xe   : > { %934 = dma.hbm_to_vmem [thread:$0]  (!%p932_p8), %s122_s20, 256, %s124_s23, [#allocation3], %s1210_s27, %s1210_s27, %s1211_s28  }
   0xf   : > { %937 = dma.hbm_to_vmem [thread:$0]  (!%p932_p8), %s136_s26, 1024, %s138_s30, [#allocation6], %s1210_s27, %s1210_s27, %s1211_s28  }
  0x10   : > { %s62_s6 = ssub.s32 %s1207_s15, %s1293_s4  ;;  %p72_p9 = scmp.ne.s32.totalorder %s1203_s14, %s1199_s13 }
  0x11   : > { %p63_p10 = scmp.eq.s32.totalorder %s62_s6, 0  ;;  %p73_p11 = scmp.eq.s32.totalorder %s1207_s15, 0 }
  0x12   : > { %p944_p12 = scmp.lt.s32.totalorder %s1207_s15, 2  ;;  %s151_s8 = sand.u32 1, %s1207_s15  }
  0x13   : > { %s1303_s7 = scalar_select %p63_p10, %s1203_s14, %s65_s5  }
  0x14   : > { %p74_p13 = por %p73_p11, %p72_p9  ;;  %s153_s9 = sand.u32 1, %s1203_s14  }
  0x15   : > { %s915_s10 = smul.u32 72, %s1207_s15  ;;  %s152_s25 = scalar_lea.sflag [#allocation3], %s151_s8 }
  0x16   : > { %s914_s11 = smul.u32 72, %s153_s9  ;;  %p1308_p0 = pnand %p944_p12, %p74_p13 }
  0x17   : > { %s160_s20 = scalar_lea.hbm %s1571_s2, %s915_s10  ;;  %s1110_s5 = scalar_lea.hbm %s1571_s2, 144 }
  0x18   : > { %s161_s22 = sshll.u32 %s160_s20, 4  ;;  %s155_s23 = scalar_lea.vmem [#allocation7], %s914_s11  ;;  %s162_s22 = int_to_ptr.hbm [resolvable:$true] %s161_s22 }
  0x19   : > { %s163_s24 = sshll.u32 %s155_s23, 4  ;;  %s1103_s26 = sshra.s32 %s162_s22, 4  ;;  %s164_s24 = int_to_ptr.vmem [resolvable:$true] %s163_s24  ;;  %s1104_s26 = int_to_ptr.hbm [resolvable:$true] %s1103_s26 }
  0x1a   : > { %s1105_s29 = scalar_lea.hbm %s1104_s26, 72  ;;  %p1107_p3 = pneg %p1308_p0 }
  0x1b   : > { %p1106_p2 = scmp.ne.s32.totalorder %s1104_s26, %s1105_s29  ;;  %p1111_p9 = scmp.lt.s32.totalorder %s1104_s26, %s1571_s2 }
  0x1c   : > { %p1112_p10 = scmp.lt.s32.totalorder %s1110_s5, %s1105_s29 }
  0x1d   : > { %p1108_p7 = pnand %p1107_p3, %p1106_p2 }
  0x1e   : > { %p1113_p11 = por %p1112_p10, %p1111_p9 }
  0x1f   : > { %p1109_p8 = pneg %p1108_p7 }
  0x21   : > { %p1114_p12 = pnand %p1113_p11, %p1109_p8 }
  0x23   : > { %1117 = shalt.err (!%p1114_p12)
}
  0x24   : > { %941 = dma.hbm_to_vmem [thread:$0]  (!%p1308_p0), %s162_s22, 1152, %s164_s24, %s152_s25, %s1210_s27, %s1210_s27, %s1211_s28  }
  0x25   : > { %175 = sbr.rel (%p1275_p6) target bundleno = 1816 (0x718), region = 32 }
  0x2a   : > { %1178 = dma.done.wait (%p79_p1), [#allocation3], 256  }
  0x2b   : > { %1180 = vsyncadd (%p79_p1), [#allocation3], 4294967040 }
  0x2c   : > { %1182 = dma.done.wait (%p79_p1), [#allocation6], 1024  }
  0x2d   : > { %1184 = vsyncadd (%p79_p1), [#allocation6], 4294966272  ;;  %s187_s8 = sand.u32 1, %s1259_s16   ;;  %s189_s27 = sand.u32 1, %s1199_s13  }
  0x2e   : > { %s916_s28 = smul.u32 72, %s189_s27  ;;  %s188_s21 = scalar_lea.sflag [#allocation3], %s187_s8 }
  0x30   : > { %s1340_s10 = scalar_lea.vmem [#allocation7], %s916_s28 }
  0x31   : > { %1186 = dma.done.wait (%p1268_p5), %s188_s21, 1152  }
  0x32   : > { %1188 = vsyncadd (%p1268_p5), %s188_s21, 4294966144  ;;  %213 = sbr.rel (%p878_p4) target bundleno = 58 (0x3a), region = 48 }
  0x37   : > { %v214_v0 = vld [vmem:[#allocation2] sm:$0xff]  ;;  %vm216_vm0 = vcmask 261120   ;;  %v215_v1 = vld [vmem:[#allocation2 + $0x8] sm:$0xff] }
  0x38   : > { %217 = vst.msk [vmem:[#allocation8] sm:$0xff] %vm216_vm0, %v214_v0 }
  0x39   : > { %218 = vst.msk [vmem:[#allocation8 + $0x8] sm:$0xff] %vm216_vm0, %v215_v1 }
  0x3a PF: > { %v1349_v2 = vld [vmem:[%s1340_s10 + $0x18] sm:$0xff]  ;;  %v1352_v3 = vld [vmem:[%s1340_s10 + $0x10] sm:$0xff]  ;;  %v1358_v5 = vld [vmem:[%s1340_s10 + $0x8] sm:$0xff]  ;;  %s1213_s17 = smov 32   ;;  %vm243_vm1 = vcmask 261120   ;;  %s1214_s11 = smov 96  }
  0x3b   : > { %262 = vmatpush.msra.mxu0 %v1349_v2  ;;  %v1012_v4 = vpack.i.bf16 %v1352_v3, %v1349_v2  ;;  %v226_v6 = vld [vmem:[#allocation5 + $0x28] sm:$0xff]  ;;  %v228_v9 = vld [vmem:[#allocation5 + $0x38] sm:$0xff]  ;;  %v225_v12 = vld [vmem:[#allocation5 + $0x20] sm:$0xff]  ;;  %s1215_s12 = smov 64   ;;  %vm462_vm2 = vcmask 523264   ;;  %s1217_s18 = smov [#allocation8]  }
  0x3c   : > { %v1361_v7 = vld [vmem:[%s1340_s10] sm:$0xff]  ;;  %291 = vrot.lane.b32.xlu1 %v226_v6, %s1213_s17  ;;  %295 = vrot.lane.b32.xlu0 %v228_v9, %s1213_s17  ;;  %v224_v10 = vld [vmem:[#allocation5 + $0x18] sm:$0xff]  ;;  %v227_v13 = vld [vmem:[#allocation5 + $0x30] sm:$0xff]  ;;  %s801_s19 = sshll.u32 %s1217_s18, 4  ;;  %s803_s23 = sshll.u32 %s1572_s3, 4  ;;  %s802_s19 = int_to_ptr.vmem [resolvable:$true] %s801_s19  ;;  %s804_s23 = int_to_ptr.hbm [resolvable:$true] %s803_s23 }
  0x3d   : > { %v1017_v8 = vpack.i.bf16 %v1361_v7, %v1358_v5  ;;  %263 = vmatpush.msra.mxu0 %v1352_v3  ;;  %287 = vrot.lane.b32.xlu2 %v224_v10, %s1213_s17  ;;  %v223_v14 = vld [vmem:[#allocation5 + $0x10] sm:$0xff]  ;;  %v221_v16 = vld [vmem:[#allocation5] sm:$0xff]  ;;  %v222_v17 = vld [vmem:[#allocation5 + $0x8] sm:$0xff]  ;;  %p947_p1 = scmp.eq.s32.totalorder %s1259_s16, 1  ;;  %s1218_s24 = smov 128  }
  0x3e   : > { %v1389_v20 = vld [vmem:[%s1340_s10 + $0x40] ss:$0 sm:$0xff]  ;;  %s1219_s25 = smov 8  }
  0x3f   : > { %264 = vmatpush.msra.mxu0 %v1358_v5  ;;  %v1369_v11 = vld [vmem:[#allocation8] sm:$0xff] }
  0x40   : > { %v1377_v15 = vld [vmem:[#allocation8 + $0x8] sm:$0xff] }
  0x41   : > { %265 = vmatpush.msra.mxu0 %v1361_v7 }
  0x42   : > { %886 = vmatmul.msk.f32.vlgmr.msra.gmra.mxu0 %vm243_vm1, %v1369_v11 }
  0x44   : > { %289 = vrot.lane.b32.xlu1 %v225_v12, %s1213_s17  ;;  %293 = vrot.lane.b32.xlu0 %v227_v13, %s1213_s17 }
  0x45   : > { %285 = vrot.lane.b32.xlu2 %v223_v14, %s1213_s17 }
  0x4a   : > { %887 = vmatmul.msk.f32.gmra.mxu0 %vm243_vm1, %v1377_v15 }
  0x4c   : > { %281 = vrot.lane.b32.xlu1 %v221_v16, %s1213_s17  ;;  %283 = vrot.lane.b32.xlu0 %v222_v17, %s1213_s17 }
  0x97   : > { %v1399_v25 = vpop.permute.xlu2 %287 }
  0x9f   : > { %v1415_v32 = vpop.permute.xlu2 %285 }
  0xae   : > { %v1384_v18 = vpop.permute.xlu0 %295  ;;  %v1386_v19 = vpop.permute.xlu1 %291 }
  0xb6   : > { %v1391_v22 = vpop.permute.xlu0 %293  ;;  %v1401_v26 = vpop.permute.xlu1 %289 }
  0xbe   : > { %v1417_v33 = vpop.permute.xlu1 %281  ;;  %v1428_v37 = vpop.permute.xlu0 %283 }
  0xbf   : > { %v267_v21 = vpop.f32.mrf.mxu0 }
  0xc0   : > { %v1394_v23 = vadd.f32 %v1389_v20, %v267_v21 }
  0xc2   : > { %v311_v24 = vmul.f32 %v1391_v22, %v1394_v23  ;;  %v307_v34 = vmul.f32 %v1415_v32, %v1394_v23  ;;  %v309_v35 = vmul.f32 %v1401_v26, %v1394_v23  ;;  %v305_v36 = vmul.f32 %v1417_v33, %v1394_v23 }
  0xc4   : > { %405 = vrot.lane.b32.xlu0 %v311_v24, %s1214_s11 }
  0xc7   : > { %v270_v27 = vpop.f32.mrf.mxu0 }
  0xc8   : > { %v1404_v28 = vadd.f32 %v1389_v20, %v270_v27 }
  0xca   : > { %v312_v29 = vmul.f32 %v1384_v18, %v1404_v28  ;;  %v310_v30 = vmul.f32 %v1386_v19, %v1404_v28  ;;  %v308_v31 = vmul.f32 %v1399_v25, %v1404_v28  ;;  %v306_v38 = vmul.f32 %v1428_v37, %v1404_v28 }
  0xcc   : > { %407 = vrot.lane.b32.xlu2 %v312_v29, %s1214_s11  ;;  %403 = vrot.lane.b32.xlu1 %v310_v30, %s1214_s11 }
  0xcd   : > { %399 = vrot.lane.b32.xlu0 %v308_v31, %s1214_s11 }
  0xd4   : > { %401 = vrot.lane.b32.xlu2 %v309_v35, %s1214_s11  ;;  %397 = vrot.lane.b32.xlu1 %v307_v34, %s1214_s11 }
  0xd5   : > { %393 = vrot.lane.b32.xlu0 %v305_v36, %s1214_s11 }
  0xdc   : > { %395 = vrot.lane.b32.xlu2 %v306_v38, %s1214_s11  ;;  %327 = vrot.lane.b32.xlu1 %v228_v9, %s1215_s12 }
  0xdd   : > { %411 = vrot.lane.b32.xlu0 %v221_v16, %s1215_s12 }
  0xe4   : > { %325 = vrot.lane.b32.xlu2 %v227_v13, %s1215_s12  ;;  %323 = vrot.lane.b32.xlu1 %v226_v6, %s1215_s12 }
  0xe5   : > { %319 = vrot.lane.b32.xlu0 %v224_v10, %s1215_s12 }
  0xec   : > { %321 = vrot.lane.b32.xlu2 %v225_v12, %s1215_s12  ;;  %317 = vrot.lane.b32.xlu1 %v223_v14, %s1215_s12 }
  0xed   : > { %315 = vrot.lane.b32.xlu0 %v222_v17, %s1215_s12 }
  0xf4   : > { %313 = vrot.lane.b32.xlu1 %v221_v16, %s1215_s12  ;;  %413 = vrot.lane.b32.xlu2 %v222_v17, %s1215_s12 }
 0x126   : > { %v408_v39 = vpop.permute.xlu2 %407 }
 0x127   : > { %888 = vmatpush.xpose.msk.msra.mxu1 %vm243_vm1, %v408_v39 }
 0x12e   : > { %v402_v40 = vpop.permute.xlu2 %401 }
 0x136   : > { %v406_v41 = vpop.permute.xlu0 %405  ;;  %v396_v44 = vpop.permute.xlu2 %395 }
 0x137   : > { %889 = vmatpush.xpose.msk.msra.mxu1 %vm243_vm1, %v406_v41 }
 0x13e   : > { %v404_v42 = vpop.permute.xlu1 %403  ;;  %v326_v47 = vpop.permute.xlu2 %325 }
 0x13f   : > { %v400_v43 = vpop.permute.xlu0 %399  ;;  %890 = vmatpush.xpose.msk.msra.mxu1 %vm243_vm1, %v404_v42  ;;  %v343_v49 = vmul.f32 %v326_v47, %v1394_v23 }
 0x143   : > { %891 = vmatpush.xpose.msk.msra.mxu1 %vm243_vm1, %v402_v40 }
 0x146   : > { %v398_v45 = vpop.permute.xlu1 %397  ;;  %v322_v53 = vpop.permute.xlu2 %321 }
 0x147   : > { %v394_v46 = vpop.permute.xlu0 %393  ;;  %892 = vmatpush.xpose.msk.msra.mxu1 %vm243_vm1, %v400_v43  ;;  %v341_v55 = vmul.f32 %v322_v53, %v1394_v23 }
 0x14b   : > { %893 = vmatpush.xpose.msk.msra.mxu1 %vm243_vm1, %v398_v45 }
 0x14e   : > { %v328_v48 = vpop.permute.xlu1 %327  ;;  %v414_v10 = vpop.permute.xlu2 %413 }
 0x14f   : > { %v344_v50 = vmul.f32 %v328_v48, %v1404_v28  ;;  %894 = vmatpush.xpose.msk.msra.mxu1 %vm243_vm1, %v396_v44  ;;  %v412_v51 = vpop.permute.xlu0 %411 }
 0x151   : > { %v992_v52 = vpack.i.bf16 %v343_v49, %v344_v50 }
 0x153   : > { %993 = vrot.lane.b32.xlu2 %v992_v52, %s1215_s12  ;;  %895 = vmatpush.xpose.msk.msra.mxu1 %vm243_vm1, %v394_v46 }
 0x156   : > { %v324_v54 = vpop.permute.xlu1 %323  ;;  %896 = vmatmul.msk.f32.vlgmr.msra.gmra.mxu1 %vm243_vm1, %v1394_v23 }
 0x157   : > { %v342_v56 = vmul.f32 %v324_v54, %v1404_v28  ;;  %v320_v58 = vpop.permute.xlu0 %319 }
 0x158   : > { %v340_v60 = vmul.f32 %v320_v58, %v1404_v28 }
 0x159   : > { %v997_v57 = vpack.i.bf16 %v341_v55, %v342_v56 }
 0x15b   : > { %998 = vrot.lane.b32.xlu0 %v997_v57, %s1215_s12 }
 0x15e   : > { %v318_v59 = vpop.permute.xlu1 %317  ;;  %897 = vmatmul.msk.f32.gmra.mxu1 %vm243_vm1, %v1404_v28 }
 0x15f   : > { %v339_v61 = vmul.f32 %v318_v59, %v1394_v23  ;;  %v316_v63 = vpop.permute.xlu0 %315 }
 0x160   : > { %v338_v1 = vmul.f32 %v316_v63, %v1404_v28 }
 0x161   : > { %v1002_v62 = vpack.i.bf16 %v339_v61, %v340_v60 }
 0x163   : > { %1003 = vrot.lane.b32.xlu2 %v1002_v62, %s1215_s12 }
 0x166   : > { %v314_v0 = vpop.permute.xlu1 %313 }
 0x167   : > { %v337_v6 = vmul.f32 %v314_v0, %v1394_v23 }
 0x169   : > { %v1007_v9 = vpack.i.bf16 %v337_v6, %v338_v1 }
 0x16b   : > { %1008 = vrot.lane.b32.xlu0 %v1007_v9, %s1215_s12 }
 0x173   : > { %1013 = vrot.lane.b32.xlu0 %v1012_v4, %s1213_s17 }
 0x1ad   : > { %v994_v12 = vpop.permute.xlu2 %993 }
 0x1ae   : > { %v996_v13 = vunpack.i.h.bf16 %v994_v12  ;;  %v995_v14 = vunpack.i.l.bf16 %v994_v12 }
 0x1b0   : > { %v384_v16 = vsel %vm243_vm1, %v995_v14, %v1384_v18  ;;  %v383_v17 = vsel %vm243_vm1, %v996_v13, %v1391_v22 }
 0x1b1   : > { %489 = vmatpush.msra.mxu2 %v384_v16 }
 0x1b3   : > { %490 = vmatpush.msra.mxu2 %v383_v17 }
 0x1bd   : > { %v1004_v21 = vpop.permute.xlu2 %1003 }
 0x1be   : > { %v1005_v28 = vunpack.i.l.bf16 %v1004_v21  ;;  %v1006_v3 = vunpack.i.h.bf16 %v1004_v21 }
 0x1c0   : > { %v380_v22 = vsel %vm243_vm1, %v1005_v28, %v1399_v25  ;;  %v379_v31 = vsel %vm243_vm1, %v1006_v3, %v1415_v32 }
 0x1cd   : > { %v999_v23 = vpop.permute.xlu0 %998 }
 0x1ce   : > { %v1001_v24 = vunpack.i.h.bf16 %v999_v23  ;;  %v1000_v27 = vunpack.i.l.bf16 %v999_v23 }
 0x1d0   : > { %v382_v2 = vsel %vm243_vm1, %v1000_v27, %v1386_v19  ;;  %v381_v4 = vsel %vm243_vm1, %v1001_v24, %v1401_v26 }
 0x1d1   : > { %491 = vmatpush.msra.mxu2 %v382_v2 }
 0x1d3   : > { %v456_v29 = vpop.f32.mrf.mxu1  ;;  %492 = vmatpush.msra.mxu2 %v381_v4 }
 0x1d4   : > { %v457_v18 = vadd.f32 %v456_v29, %v412_v51  ;;  %v1216_v29 = vmov 32.0  }
 0x1d5   : > { %493 = vmatpush.msra.mxu2 %v380_v22 }
 0x1d6   : > { %v463_v30 = vsel %vm462_vm2, %v457_v18, -inf }
 0x1d7   : > { %464 = vmax.xlane.f32.xlu1 %v463_v30  ;;  %494 = vmatpush.msra.mxu2 %v379_v31  ;;  %v1506_v30 = vld [vmem:[%s1340_s10 + $0x42] ss:$0 sm:$0xff] }
 0x1db   : > { %v459_v19 = vpop.f32.mrf.mxu1 }
 0x1dc   : > { %v460_v34 = vadd.f32 %v459_v19, %v414_v10 }
 0x1dd   : > { %v1009_v35 = vpop.permute.xlu0 %1008 }
 0x1de   : > { %v1011_v36 = vunpack.i.h.bf16 %v1009_v35  ;;  %v1010_v26 = vunpack.i.l.bf16 %v1009_v35  ;;  %v466_v38 = vsel %vm462_vm2, %v460_v34, -inf }
 0x1df   : > { %467 = vmax.xlane.f32.xlu2 %v466_v38 }
 0x1e0   : > { %v378_v39 = vsel %vm243_vm1, %v1010_v26, %v1428_v37  ;;  %v377_v25 = vsel %vm243_vm1, %v1011_v36, %v1417_v33 }
 0x1e1   : > { %495 = vmatpush.msra.mxu2 %v378_v39 }
 0x1e3   : > { %496 = vmatpush.msra.mxu2 %v377_v25 }
 0x1e5   : > { %v1014_v46 = vpop.permute.xlu0 %1013 }
 0x1e6   : > { %v1015_v33 = vunpack.i.l.bf16 %v1014_v46  ;;  %v1016_v47 = vunpack.i.h.bf16 %v1014_v46 }
 0x1e8   : > { %580 = vmatpush.msra.mxu3 %v1015_v33 }
 0x1ea   : > { %581 = vmatpush.msra.mxu3 %v1016_v47 }
 0x1f0   : > { %559 = vrot.lane.b32.xlu1 %v1389_v20, %s1213_s17 }
 0x1f8   : > { %648 = vrot.lane.b32.xlu1 %v1506_v30, %s1214_s11 }
 0x24a   : > { %v465_v32 = vpop.xlane.xlu1 %464 }
 0x24b   : > { %v469_v40 = vsub.f32 %v457_v18, %v465_v32 }
 0x24d   : > { %v471_v41 = vmul.f32 1.442695, %v469_v40 }
 0x24f   : > { %1025 = vpow2.f32 %v471_v41 }
 0x252   : > { %v468_v42 = vpop.xlane.xlu2 %467 }
 0x253   : > { %v470_v43 = vsub.f32 %v460_v34, %v468_v42  ;;  %v238_v42 = vld [vmem:[%s1340_s10 + $0x38] sm:$0xff] }
 0x254   : > { %672 = vmatpush.msrb.mxu0 %v238_v42 }
 0x255   : > { %v1026_v44 = vpop.eup %1025  ;;  %v473_v45 = vmul.f32 1.442695, %v470_v43  ;;  %v237_v43 = vld [vmem:[%s1340_s10 + $0x30] sm:$0xff] }
 0x256   : > { %898 = vmatmul.msk.f32.vlgmr.msra.gmra.mxu2 %vm462_vm2, %v1026_v44  ;;  %673 = vmatpush.msrb.mxu0 %v237_v43  ;;  %v236_v44 = vld [vmem:[%s1340_s10 + $0x28] sm:$0xff] }
 0x257   : > { %1027 = vpow2.f32 %v473_v45  ;;  %693 = vrot.lane.b32.xlu1 %v237_v43, %s1215_s12  ;;  %v235_v45 = vld [vmem:[%s1340_s10 + $0x20] sm:$0xff] }
 0x258   : > { %674 = vmatpush.msrb.mxu0 %v236_v44 }
 0x25a   : > { %675 = vmatpush.msrb.mxu0 %v235_v45 }
 0x25d   : > { %v1028_v37 = vpop.eup %1027 }
 0x25e   : > { %899 = vmatmul.msk.f32.gmra.mxu2 %vm462_vm2, %v1028_v37 }
 0x25f   : > { %691 = vrot.lane.b32.xlu1 %v236_v44, %s1215_s12 }
 0x262   : > { %v560_v17 = vpop.permute.xlu1 %559 }
 0x2d9   : > { %v498_v20 = vpop.f32.mrf.mxu2 }
 0x2da   : > { %506 = vrot.lane.b32.xlu0 %v498_v20, %s1214_s11 }
 0x2e1   : > { %v501_v48 = vpop.f32.mrf.mxu2 }
 0x2e2   : > { %508 = vrot.lane.b32.xlu0 %v501_v48, %s1214_s11 }
 0x2ea   : > { %1018 = vrot.lane.b32.xlu0 %v1017_v8, %s1213_s17 }
 0x34c   : > { %v507_v49 = vpop.permute.xlu0 %506 }
 0x34d   : > { %1029 = vrcp.f32 %v507_v49  ;;  %v523_v54 = vand.u32 2147483648, %v507_v49  ;;  %v521_v56 = vand.u32 2147483647, %v507_v49  ;;  %vm517_vm4 = vweird.f32 %v507_v49 }
 0x34f   : > { %v524_v59 = vor.u32 1.1754944e-38, %v523_v54  ;;  %vm522_vm6 = vcmp.eq.f32.partialorder %v521_v56, 8.507059e+37 }
 0x353   : > { %v1030_v50 = vpop.eup %1029 }
 0x354   : > { %v513_v51 = vmul.f32 %v1030_v50, %v507_v49  ;;  %v509_v52 = vpop.permute.xlu0 %508  ;;  %vm518_vm3 = vweird.f32 %v1030_v50 }
 0x355   : > { %1031 = vrcp.f32 %v509_v52  ;;  %vm519_vm5 = vmor %vm517_vm4, %vm518_vm3  ;;  %v538_v63 = vand.u32 2147483648, %v509_v52  ;;  %v536_v9 = vand.u32 2147483647, %v509_v52  ;;  %vm532_vm8 = vweird.f32 %v509_v52 }
 0x356   : > { %v514_v53 = vsub.f32 1.0, %v513_v51  ;;  %1033 = vrcp.f32 %v1216_v29 }
 0x357   : > { %v539_v12 = vor.u32 1.1754944e-38, %v538_v63  ;;  %vm537_vm10 = vcmp.eq.f32.partialorder %v536_v9, 8.507059e+37 }
 0x358   : > { %v515_v55 = vmul.f32 %v1030_v50, %v514_v53 }
 0x35a   : > { %v516_v57 = vadd.f32 %v1030_v50, %v515_v55 }
 0x35b   : > { %v1032_v58 = vpop.eup %1031 }
 0x35c   : > { %v528_v60 = vmul.f32 %v1032_v58, %v509_v52  ;;  %v1019_v61 = vpop.permute.xlu0 %1018  ;;  %v520_v5 = vsel %vm519_vm5, %v1030_v50, %v516_v57  ;;  %vm533_vm7 = vweird.f32 %v1032_v58  ;;  %v1034_v18 = vpop.eup %1033 }
 0x35d   : > { %v1020_v7 = vunpack.i.l.bf16 %v1019_v61  ;;  %v525_v8 = vsel %vm522_vm6, %v524_v59, %v520_v5  ;;  %v1021_v0 = vunpack.i.h.bf16 %v1019_v61  ;;  %vm534_vm9 = vmor %vm532_vm8, %vm533_vm7  ;;  %v600_v22 = vmul.f32 32.0, %v1034_v18  ;;  %v649_v61 = vpop.permute.xlu1 %648 }
 0x35e   : > { %v529_v62 = vsub.f32 1.0, %v528_v60  ;;  %v526_v6 = vmul.f32 %v525_v8, %v498_v20  ;;  %vm604_vm11 = vweird.f32 %v1034_v18 }
 0x35f   : > { %582 = vmatpush.msra.mxu3 %v1020_v7  ;;  %v601_v31 = vsub.f32 1.0, %v600_v22 }
 0x360   : > { %v530_v1 = vmul.f32 %v1032_v58, %v529_v62 }
 0x361   : > { %583 = vmatpush.msra.mxu3 %v1021_v0 }
 0x362   : > { %900 = vmatmul.msk.f32.vlgmr.msra.gmra.mxu3 %vm243_vm1, %v526_v6  ;;  %v531_v10 = vadd.f32 %v1032_v58, %v530_v1 }
 0x364   : > { %v535_v13 = vsel %vm534_vm9, %v1032_v58, %v531_v10  ;;  %v1024_v10 = vld [vmem:[%s1340_s10 + $0x41] ss:$0 sm:$0xff] }
 0x365   : > { %v540_v14 = vsel %vm537_vm10, %v539_v12, %v535_v13  ;;  %698 = vrot.lane.b32.xlu1 %v1024_v10, %s1215_s12  ;;  %v694_v12 = vpop.permute.xlu1 %693 }
 0x366   : > { %v541_v16 = vmul.f32 %v540_v14, %v501_v48 }
 0x36a   : > { %901 = vmatmul.msk.f32.gmra.mxu3 %vm243_vm1, %v541_v16 }
 0x36d   : > { %v692_v13 = vpop.permute.xlu1 %691 }
 0x3e5   : > { %v585_v21 = vpop.f32.mrf.mxu3 }
 0x3e6   : > { %v586_v23 = vadd.f32 %v585_v21, %v560_v17 }
 0x3e8   : > { %v591_v24 = vadd.f32 %v586_v23, %v1369_v11  ;;  %v602_v11 = vmul.f32 %v1034_v18, %v601_v31 }
 0x3ea   : > { %v593_v27 = vsel %vm243_vm1, %v591_v24, 0.0  ;;  %v603_v19 = vadd.f32 %v1034_v18, %v602_v11 }
 0x3eb   : > { %594 = vadd.xlane.f32.xlu0 %v593_v27 }
 0x3ec   : > { %v1510_v34 = vsel %vm604_vm11, %v1034_v18, %v603_v19 }
 0x3ed   : > { %v588_v28 = vpop.f32.mrf.mxu3 }
 0x3ee   : > { %v589_v2 = vadd.f32 %v588_v28, %v560_v17  ;;  %v699_v28 = vpop.permute.xlu1 %698 }
 0x3f0   : > { %v592_v3 = vadd.f32 %v589_v2, %v1377_v15 }
 0x3f2   : > { %v596_v4 = vsel %vm243_vm1, %v592_v3, 0.0 }
 0x3f3   : > { %597 = vadd.xlane.f32.xlu2 %v596_v4 }
 0x3ff   : > { %689 = vrot.lane.b32.xlu0 %v235_v45, %s1215_s12 }
 0x45e   : > { %v595_v15 = vpop.xlane.xlu0 %594 }
 0x45f   : > { %v606_v35 = vmul.f32 %v1510_v34, %v595_v15 }
 0x461   : > { %v608_v36 = vsub.f32 %v591_v24, %v606_v35 }
 0x463   : > { %v610_v26 = vmul.f32 %v608_v36, %v608_v36 }
 0x465   : > { %v612_v38 = vsel %vm243_vm1, %v610_v26, 0.0 }
 0x466   : > { %v598_v39 = vpop.xlane.xlu2 %597  ;;  %613 = vadd.xlane.f32.xlu2 %v612_v38 }
 0x467   : > { %v607_v25 = vmul.f32 %v1510_v34, %v598_v39 }
 0x469   : > { %v609_v32 = vsub.f32 %v592_v3, %v607_v25 }
 0x46b   : > { %v611_v40 = vmul.f32 %v609_v32, %v609_v32 }
 0x46d   : > { %v615_v41 = vsel %vm243_vm1, %v611_v40, 0.0 }
 0x46e   : > { %616 = vadd.xlane.f32.xlu2 %v615_v41 }
 0x471   : > { %v690_v14 = vpop.permute.xlu0 %689 }
 0x486   : > { %695 = vrot.lane.b32.xlu2 %v238_v42, %s1215_s12 }
 0x4d9   : > { %v614_v37 = vpop.xlane.xlu2 %613 }
 0x4da   : > { %v618_v46 = vmul.f32 %v614_v37, %v1510_v34 }
 0x4dc   : > { %v620_v33 = vadd.f32 1e-06, %v618_v46 }
 0x4de   : > { %1035 = vrsqrt.f32 %v620_v33  ;;  %vm628_vm13 = vweird.f32 %v620_v33 }
 0x4e1   : > { %v617_v47 = vpop.xlane.xlu2 %616 }
 0x4e2   : > { %v619_v20 = vmul.f32 %v617_v47, %v1510_v34 }
 0x4e4   : > { %v1036_v48 = vpop.eup %1035  ;;  %v621_v49 = vadd.f32 1e-06, %v619_v20 }
 0x4e5   : > { %v623_v50 = vmul.f32 %v1036_v48, %v620_v33  ;;  %vm629_vm12 = vweird.f32 %v1036_v48 }
 0x4e6   : > { %1037 = vrsqrt.f32 %v621_v49  ;;  %vm630_vm14 = vmor %vm628_vm13, %vm629_vm12  ;;  %vm638_vm0 = vweird.f32 %v621_v49 }
 0x4e7   : > { %v624_v51 = vmul.f32 %v1036_v48, %v623_v50 }
 0x4e9   : > { %v625_v52 = vmul.f32 0.5, %v624_v51  ;;  %v696_v9 = vpop.permute.xlu2 %695 }
 0x4ea   : > { %904 = vmatpush.xpose.msk.msrb.mxu3 %vm462_vm2, %v696_v9 }
 0x4eb   : > { %v626_v53 = vsub.f32 1.5, %v625_v52 }
 0x4ec   : > { %v1038_v54 = vpop.eup %1037 }
 0x4ed   : > { %v627_v55 = vmul.f32 %v1036_v48, %v626_v53  ;;  %v633_v56 = vmul.f32 %v1038_v54, %v621_v49  ;;  %vm639_vm15 = vweird.f32 %v1038_v54 }
 0x4ee   : > { %vm640_vm3 = vmor %vm638_vm0, %vm639_vm15  ;;  %905 = vmatpush.xpose.msk.msrb.mxu3 %vm462_vm2, %v694_v12 }
 0x4ef   : > { %v634_v57 = vmul.f32 %v1038_v54, %v633_v56  ;;  %v631_v58 = vsel %vm630_vm14, %v1036_v48, %v627_v55 }
 0x4f0   : > { %v642_v59 = vmul.f32 %v631_v58, %v608_v36 }
 0x4f1   : > { %v635_v60 = vmul.f32 0.5, %v634_v57 }
 0x4f2   : > { %v645_v5 = vmul.f32 %v1506_v30, %v642_v59  ;;  %906 = vmatpush.xpose.msk.msrb.mxu3 %vm462_vm2, %v692_v13 }
 0x4f3   : > { %v636_v7 = vsub.f32 1.5, %v635_v60 }
 0x4f4   : > { %v651_v8 = vadd.f32 %v649_v61, %v645_v5 }
 0x4f5   : > { %v637_v62 = vmul.f32 %v1038_v54, %v636_v7 }
 0x4f6   : > { %902 = vmatmul.msk.f32.vlgmr.msrb.gmra.mxu0 %vm243_vm1, %v651_v8  ;;  %907 = vmatpush.xpose.msk.msrb.mxu3 %vm462_vm2, %v690_v14 }
 0x4f7   : > { %v641_v63 = vsel %vm640_vm3, %v1038_v54, %v637_v62 }
 0x4f8   : > { %v643_v0 = vmul.f32 %v641_v63, %v609_v32 }
 0x4fa   : > { %v646_v1 = vmul.f32 %v1506_v30, %v643_v0 }
 0x4fc   : > { %v652_v6 = vadd.f32 %v649_v61, %v646_v1 }
 0x4fe   : > { %903 = vmatmul.msk.f32.gmra.mxu0 %vm243_vm1, %v652_v6 }
 0x573   : > { %v677_v16 = vpop.f32.mrf.mxu0 }
 0x574   : > { %v678_v17 = vadd.f32 %v1024_v10, %v677_v16 }
 0x576   : > { %v683_v21 = vmax.f32 %v678_v17, 0.0 }
 0x578   : > { %908 = vmatmul.msk.f32.vlgmr.msrb.gmra.mxu3 %vm462_vm2, %v683_v21 }
 0x57b   : > { %v680_v23 = vpop.f32.mrf.mxu0 }
 0x57c   : > { %v681_v24 = vadd.f32 %v1024_v10, %v680_v23 }
 0x57e   : > { %v684_v27 = vmax.f32 %v681_v24, 0.0 }
 0x580   : > { %909 = vmatmul.msk.f32.gmra.mxu3 %vm462_vm2, %v684_v27 }
 0x5fb   : > { %v732_v2 = vpop.f32.mrf.mxu3 }
 0x5fc   : > { %v733_v3 = vadd.f32 %v732_v2, %v699_v28 }
 0x5fe   : > { %v738_v4 = vadd.f32 %v733_v3, %v651_v8 }
 0x600   : > { %v740_v29 = vsel %vm243_vm1, %v738_v4, 0.0 }
 0x601   : > { %741 = vadd.xlane.f32.xlu2 %v740_v29 }
 0x603   : > { %v735_v18 = vpop.f32.mrf.mxu3 }
 0x604   : > { %v736_v22 = vadd.f32 %v735_v18, %v699_v28 }
 0x606   : > { %v739_v31 = vadd.f32 %v736_v22, %v652_v6 }
 0x608   : > { %v743_v11 = vsel %vm243_vm1, %v739_v31, 0.0 }
 0x609   : > { %744 = vadd.xlane.f32.xlu1 %v743_v11 }
 0x622   : > { %784 = vrot.lane.b32.xlu1 %v1506_v30, %s1215_s12 }
 0x674   : > { %v742_v19 = vpop.xlane.xlu2 %741 }
 0x675   : > { %v746_v15 = vmul.f32 %v742_v19, %v1510_v34 }
 0x677   : > { %v748_v35 = vsub.f32 %v738_v4, %v746_v15 }
 0x679   : > { %v750_v36 = vmul.f32 %v748_v35, %v748_v35 }
 0x67b   : > { %v752_v26 = vsel %vm243_vm1, %v750_v36, 0.0 }
 0x67c   : > { %v745_v38 = vpop.xlane.xlu1 %744  ;;  %753 = vadd.xlane.f32.xlu0 %v752_v26 }
 0x67d   : > { %v747_v39 = vmul.f32 %v745_v38, %v1510_v34 }
 0x67f   : > { %v749_v25 = vsub.f32 %v739_v31, %v747_v39 }
 0x681   : > { %v751_v32 = vmul.f32 %v749_v25, %v749_v25 }
 0x683   : > { %v755_v40 = vsel %vm243_vm1, %v751_v32, 0.0 }
 0x684   : > { %756 = vadd.xlane.f32.xlu2 %v755_v40 }
 0x694   : > { %v785_v52 = vpop.permute.xlu1 %784 }
 0x69c   : > { %789 = vrot.lane.b32.xlu2 %v1506_v30, %s1213_s17 }
 0x6ef   : > { %v754_v41 = vpop.xlane.xlu0 %753 }
 0x6f0   : > { %v758_v42 = vmul.f32 %v754_v41, %v1510_v34 }
 0x6f2   : > { %v760_v43 = vadd.f32 1e-06, %v758_v42 }
 0x6f4   : > { %1039 = vrsqrt.f32 %v760_v43  ;;  %vm768_vm4 = vweird.f32 %v760_v43 }
 0x6f7   : > { %v757_v44 = vpop.xlane.xlu2 %756 }
 0x6f8   : > { %v759_v45 = vmul.f32 %v757_v44, %v1510_v34 }
 0x6fa   : > { %v1040_v37 = vpop.eup %1039  ;;  %v761_v46 = vadd.f32 1e-06, %v759_v45 }
 0x6fb   : > { %v763_v33 = vmul.f32 %v1040_v37, %v760_v43  ;;  %vm769_vm2 = vweird.f32 %v1040_v37 }
 0x6fc   : > { %1041 = vrsqrt.f32 %v761_v46  ;;  %vm770_vm5 = vmor %vm768_vm4, %vm769_vm2  ;;  %vm778_vm7 = vweird.f32 %v761_v46 }
 0x6fd   : > { %v764_v47 = vmul.f32 %v1040_v37, %v763_v33 }
 0x6ff   : > { %v765_v20 = vmul.f32 0.5, %v764_v47  ;;  %v790_v34 = vpop.permute.xlu2 %789 }
 0x701   : > { %v766_v48 = vsub.f32 1.5, %v765_v20 }
 0x702   : > { %v1042_v49 = vpop.eup %1041 }
 0x703   : > { %v773_v50 = vmul.f32 %v1042_v49, %v761_v46  ;;  %v767_v30 = vmul.f32 %v1040_v37, %v766_v48  ;;  %vm779_vm6 = vweird.f32 %v1042_v49 }
 0x704   : > { %vm780_vm8 = vmor %vm778_vm7, %vm779_vm6 }
 0x705   : > { %v774_v51 = vmul.f32 %v1042_v49, %v773_v50  ;;  %v771_v53 = vsel %vm770_vm5, %v1040_v37, %v767_v30 }
 0x706   : > { %v782_v54 = vmul.f32 %v771_v53, %v748_v35 }
 0x707   : > { %v775_v55 = vmul.f32 0.5, %v774_v51 }
 0x708   : > { %v787_v56 = vmul.f32 %v785_v52, %v782_v54 }
 0x709   : > { %v776_v57 = vsub.f32 1.5, %v775_v55 }
 0x70a   : > { %v792_v58 = vadd.f32 %v790_v34, %v787_v56 }
 0x70b   : > { %v777_v59 = vmul.f32 %v1042_v49, %v776_v57 }
 0x70c   : > { %794 = vst.msk [vmem:[#allocation8] sm:$0xff] %vm243_vm1, %v792_v58 }
 0x70d   : > { %v781_v60 = vsel %vm780_vm8, %v1042_v49, %v777_v59 }
 0x70e   : > { %v783_v61 = vmul.f32 %v781_v60, %v749_v25 }
 0x710   : > { %v788_v5 = vmul.f32 %v785_v52, %v783_v61 }
 0x712   : > { %v793_v7 = vadd.f32 %v790_v34, %v788_v5 }
 0x714   : > { %795 = vst.msk [vmem:[#allocation8 + $0x8] sm:$0xff] %vm243_vm1, %v793_v7 }
 0x715   : > { %928 = dma.vmem_to_hbm [thread:$0]  (%p947_p1), %s802_s19, 256, %s804_s23, [#allocation4], %s1218_s24, %s1218_s24, %s1219_s25  }
 0x716   : > { %1190 = dma.done.wait (%p947_p1), [#allocation4], 256  }
 0x717   : > { %1192 = vsyncadd (%p947_p1), [#allocation4], 4294967040 }
 0x718 PF: > { %p13_p4 = scmp.ge.s32.totalorder %s1293_s4, 4   ;;  %s1576_s12 = smov %s1199_s13 }
 0x719   : > { %s1577_s13 = smov %s1203_s14  ;;  %s1578_s14 = smov %s1303_s7 }
 0x71a   : > { %s1579_s15 = smov %s1293_s4  ;;  %15 = sbr.rel (!%p13_p4) target bundleno = 4 (0x4), region = 80 }
 0x71f   :  { %820 = vsyncpa [#allocation3], 1 }
 0x720   :  { %822 = vsyncpa [#allocation3 + $0x1], 1 }
 0x721   :  { %823 = vsyncpa [#allocation6], 1 }
 0x722   :  { %824 = vsyncpa [#allocation4], 1 }
 0x723   :  { %826 = vsyncpa [#allocation4 + $0x1], 1 }

</bundles_post_ra>
